<compile_context>
chip_gen: v7x
topology: tpu7x:2x2x1
jax: 0.10.0
libtpu: 0.0.40
codegen_flags: <defaults>
</compile_context>

<pallas_src>
import functools

import jax
import jax.numpy as jnp
from jax.experimental import pallas as pl
from jax.experimental.pallas import tpu as pltpu


def _round_up(x, m):
    return ((x + m - 1) // m) * m


def _cdiv(a, b):
    return (a + b - 1) // b


def encoder_kernel(x_ref, w_ref, o_ref):
    """x_ref: [K, tB, tT] frames, w_ref: [K, tN, 1] filters, o_ref: [tB, tN, tT]."""
    K = x_ref.shape[0]

    # f32 accumulation for f32 inputs; native bf16 accumulation for bf16 inputs
    # (v6e/v7x bf16 VALU, K is tiny) -> no per-tap up-cast on the VPU.
    acc_dtype = jnp.float32 if x_ref.dtype == jnp.float32 else x_ref.dtype

    w = w_ref[...].astype(acc_dtype)  # [K, tN, 1] -- tiny, cast hoisted out of loop

    # Tap 0 initializes the accumulator (no explicit zeros pass).
    acc = x_ref[0].astype(acc_dtype)[:, None, :] * w[0][None, :, :]   # [tB, tN, tT]

    # Remaining taps (K is a small static int -> unrolled at trace time).
    for k in range(1, K):
        acc = acc + x_ref[k].astype(acc_dtype)[:, None, :] * w[k][None, :, :]

    # ReLU fused into the store.
    o_ref[...] = jnp.maximum(acc, 0).astype(o_ref.dtype)


_OUT_BLOCK_BUDGET = 4 * 1024 * 1024   # double-buffered f32 output-block budget (v5e-safe)
_LANE = 128
_SUBLANE = 16                          # covers both f32 (8) and bf16 (16) packing


def _choose_tiles(B, N, T_out):
    """Pick (tB, tN, tT): lane-dense output tiles inside the VMEM budget."""
    tN = _round_up(min(N, 128), _SUBLANE)

    # Batch tile: largest tB that still leaves room for a >=128-lane time tile.
    tB = max(1, _OUT_BLOCK_BUDGET // (2 * 4 * tN * _LANE))
    if tB < B:
        # If B itself gets tiled, keep the frames block sublane-aligned.
        tB = max(_SUBLANE, (tB // _SUBLANE) * _SUBLANE)
    tB = min(B, tB)

    # Time tile: fill the remaining budget, lane-dense.
    tT = _OUT_BLOCK_BUDGET // (2 * 4 * tB * tN)
    tT = max(_LANE, (tT // _LANE) * _LANE)
    tT = min(tT, _round_up(T_out, _LANE))

    # v7x: keep >= ~8 grid steps so both TensorCores get work and the pipeline
    # has ramp; per-step overhead (~0.35us) is negligible at these tile sizes.
    def n_steps(t):
        return _cdiv(B, tB) * _cdiv(N, tN) * _cdiv(T_out, t)

    while tT > _LANE and n_steps(tT) < 8:
        tT = max(_LANE, ((tT // 2) // _LANE) * _LANE)

    return tB, tN, tT


@functools.partial(jax.jit, static_argnames=("kernel_size", "out_dtype"))
def encoder_forward(x, weight, kernel_size=2, out_dtype=None):
    """Pallas equivalent of Encoder.forward (in_channels == 1).

    x:      [B, L]      (float32 or bf16)
    weight: [N, 1, K]   (PyTorch Conv1d weight layout, bias=False)
    returns [B, N, T_out], T_out = (L - K) // (K // 2) + 1

    out_dtype: optional narrower activation dtype (e.g. jnp.bfloat16) if the
    downstream consumer allows it -- the kernel is HBM-write-bound, so halving
    output bytes is the single biggest possible win.
    """
    K = kernel_size
    assert K >= 2, "kernel_size must be >= 2 (stride = kernel_size // 2)"
    stride = K // 2

    B, L = x.shape
    N, cin, kw = weight.shape
    assert cin == 1 and kw == K, "Encoder kernel assumes in_channels == 1"
    assert L >= K, "input too short for the convolution window"

    T_out = (L - K) // stride + 1
    out_dtype = x.dtype if out_dtype is None else jnp.dtype(out_dtype)

    # ---- tile / padding choices --------------------------------------------
    tB, tN, tT = _choose_tiles(B, N, T_out)
    B_pad = _round_up(B, tB)
    N_pad = _round_up(N, tN)
    T_pad = _round_up(T_out, tT)

    # ---- pad batch, build unit-stride frames[k, b, t] = x[b, t*stride + k] --
    x_b = jnp.pad(x, ((0, B_pad - B), (0, 0))) if B_pad > B else x
    needed = (T_pad - 1) * stride + K
    if needed > L:
        x_use = jnp.pad(x_b, ((0, 0), (0, needed - L)))
    else:
        x_use = x_b[:, :needed]
    frames = jnp.stack(
        [
            jax.lax.slice(
                x_use, (0, k), (B_pad, k + (T_pad - 1) * stride + 1), (1, stride)
            )
            for k in range(K)
        ],
        axis=0,
    )  # [K, B_pad, T_pad]

    # ---- weight as [K, N_pad, 1] so N lands on the sublane axis in-kernel ---
    w_kn = jnp.transpose(weight.reshape(N, K), (1, 0))          # [K, N]
    w_kn = jnp.pad(w_kn, ((0, 0), (0, N_pad - N)))              # [K, N_pad]
    w_kn1 = w_kn[:, :, None].astype(x.dtype)                    # [K, N_pad, 1]

    grid = (B_pad // tB, T_pad // tT, N_pad // tN)

    # ---- explicit VMEM budget: 2x each block + f32 acc/broadcast temporaries
    item = jnp.dtype(x.dtype).itemsize
    out_item = jnp.dtype(out_dtype).itemsize
    vmem_bytes = (
        2 * tB * tN * tT * out_item        # double-buffered output block
        + 2 * K * tB * tT * item           # double-buffered frames block
        + 2 * K * tN * item                # double-buffered weight block
        + 4 * tB * tN * tT * 4             # f32 acc + broadcast temporaries headroom
        + (2 << 20)                        # slack
    )
    vmem_bytes = int(min(max(vmem_bytes, 16 << 20), 48 << 20))

    out_padded = pl.pallas_call(
        encoder_kernel,
        out_shape=jax.ShapeDtypeStruct((B_pad, N_pad, T_pad), out_dtype),
        grid_spec=pltpu.PrefetchScalarGridSpec(
            num_scalar_prefetch=0,
            grid=grid,
            in_specs=[
                # frames: block index is constant across the inner N axis, so
                # the block stays resident (one DMA per (b, t) tile).
                pl.BlockSpec((K, tB, tT), lambda bi, ti, ni: (0, bi, ti)),
                pl.BlockSpec((K, tN, 1), lambda bi, ti, ni: (0, ni, 0)),
            ],
            out_specs=pl.BlockSpec((tB, tN, tT), lambda bi, ti, ni: (bi, ni, ti)),
        ),
        compiler_params=pltpu.CompilerParams(
            dimension_semantics=("parallel", "parallel", "parallel"),
            vmem_limit_bytes=vmem_bytes,
        ),
    )(frames, w_kn1)

    return out_padded[:B, :N, :T_out]


def _reference_forward(x, weight, kernel_size=2):
    """Pure-JAX reference (mirrors torch Conv1d + relu)."""
    stride = kernel_size // 2
    x_ncl = x[:, None, :]
    out = jax.lax.conv_general_dilated(
        x_ncl,
        weight,
        window_strides=(stride,),
        padding="VALID",
        dimension_numbers=("NCH", "OIH", "NCH"),
    )
    return jnp.maximum(out, 0.0)


if __name__ == "__main__":
    # Small deterministic example consistent with the module:
    #   B = 2 utterances, L = 129 samples -> T_out = 128, N = 64 filters, K = 2.
    B, L = 2, 129
    KERNEL_SIZE = 2
    OUT_CHANNELS = 64
    IN_CHANNELS = 1

    key = jax.random.PRNGKey(0)
    kx, kw = jax.random.split(key)

    x = jax.random.normal(kx, (B, L), dtype=jnp.float32)

    fan_in = IN_CHANNELS * KERNEL_SIZE
    bound = 1.0 / (fan_in ** 0.5)
    weight = jax.random.uniform(
        kw,
        (OUT_CHANNELS, IN_CHANNELS, KERNEL_SIZE),
        minval=-bound,
        maxval=bound,
        dtype=jnp.float32,
    )

    out = jax.block_until_ready(encoder_forward(x, weight, kernel_size=KERNEL_SIZE))
    ref = jax.block_until_ready(_reference_forward(x, weight, kernel_size=KERNEL_SIZE))

    if out.shape != ref.shape:
        raise AssertionError(f"shape mismatch: {out.shape} vs {ref.shape}")
    if not bool(jnp.allclose(out, ref, atol=1e-5, rtol=1e-5)):
        raise AssertionError("Pallas Encoder output does not match reference")

    print("KERNEL_OK")
</pallas_src>

<mosaic_0001>
module attributes {stable_mosaic.version = 11 : i64} {
  func.func @encoder_kernel(%arg0: i32, %arg1: i32, %arg2: i32, %arg3: memref<2x2x128xf32, #tpu.memory_space<vmem>>, %arg4: memref<2x64x1xf32, #tpu.memory_space<vmem>>, %arg5: memref<2x64x128xf32, #tpu.memory_space<vmem>>) attributes {dimension_semantics = [#tpu.dimension_semantics<parallel>, #tpu.dimension_semantics<parallel>, #tpu.dimension_semantics<parallel>], iteration_bounds = array<i64: 1, 1, 1>, scalar_prefetch = 0 : i64, scratch_operands = 0 : i64, tpu.core_type = #tpu.core_type<tc>, window_params = [{transform_indices = @transform_0, window_bounds = array<i64: 2, 2, 128>}, {transform_indices = @transform_1, window_bounds = array<i64: 2, 64, 1>}, {transform_indices = @transform_2, window_bounds = array<i64: 2, 64, 128>}]} {
    %c0 = arith.constant 0 : index
    %c0_0 = arith.constant 0 : index
    %c0_1 = arith.constant 0 : index
    %0 = vector.load %arg4[%c0, %c0_0, %c0_1] : memref<2x64x1xf32, #tpu.memory_space<vmem>>, vector<2x64x1xf32>
    %c0_2 = arith.constant 0 : index
    %c0_3 = arith.constant 0 : index
    %c0_4 = arith.constant 0 : index
    %1 = vector.load %arg3[%c0_2, %c0_3, %c0_4] : memref<2x2x128xf32, #tpu.memory_space<vmem>>, vector<1x2x128xf32>
    %2 = vector.shape_cast %1 : vector<1x2x128xf32> to vector<2x128xf32>
    %3 = vector.shape_cast %2 : vector<2x128xf32> to vector<2x1x128xf32>
    %4 = vector.extract_strided_slice %0 {offsets = [0, 0, 0], sizes = [1, 64, 1], strides = [1, 1, 1]} : vector<2x64x1xf32> to vector<1x64x1xf32>
    %5 = vector.shape_cast %4 : vector<1x64x1xf32> to vector<64x1xf32>
    %6 = vector.shape_cast %5 : vector<64x1xf32> to vector<1x64x1xf32>
    %7 = vector.broadcast %3 : vector<2x1x128xf32> to vector<2x64x128xf32>
    %8 = vector.broadcast %6 : vector<1x64x1xf32> to vector<2x64x128xf32>
    %9 = arith.mulf %7, %8 : vector<2x64x128xf32>
    %c1 = arith.constant 1 : index
    %c0_5 = arith.constant 0 : index
    %c0_6 = arith.constant 0 : index
    %10 = vector.load %arg3[%c1, %c0_5, %c0_6] : memref<2x2x128xf32, #tpu.memory_space<vmem>>, vector<1x2x128xf32>
    %11 = vector.shape_cast %10 : vector<1x2x128xf32> to vector<2x128xf32>
    %12 = vector.shape_cast %11 : vector<2x128xf32> to vector<2x1x128xf32>
    %13 = vector.extract_strided_slice %0 {offsets = [1, 0, 0], sizes = [1, 64, 1], strides = [1, 1, 1]} : vector<2x64x1xf32> to vector<1x64x1xf32>
    %14 = vector.shape_cast %13 : vector<1x64x1xf32> to vector<64x1xf32>
    %15 = vector.shape_cast %14 : vector<64x1xf32> to vector<1x64x1xf32>
    %16 = vector.broadcast %12 : vector<2x1x128xf32> to vector<2x64x128xf32>
    %17 = vector.broadcast %15 : vector<1x64x1xf32> to vector<2x64x128xf32>
    %18 = arith.mulf %16, %17 : vector<2x64x128xf32>
    %19 = arith.addf %9, %18 : vector<2x64x128xf32>
    %cst = arith.constant 0.000000e+00 : f32
    %20 = vector.broadcast %cst : f32 to vector<2x64x128xf32>
    %21 = arith.maximumf %19, %20 : vector<2x64x128xf32>
    %c0_7 = arith.constant 0 : index
    %c0_8 = arith.constant 0 : index
    %c0_9 = arith.constant 0 : index
    %22 = vector.load %arg5[%c0_7, %c0_8, %c0_9] : memref<2x64x128xf32, #tpu.memory_space<vmem>>, vector<2x64x128xf32>
    tpu.vector_store %arg5[%c0_7, %c0_8, %c0_9], %21 {strides = array<i32>} : memref<2x64x128xf32, #tpu.memory_space<vmem>>, vector<2x64x128xf32>,
    return
  }
  func.func @transform_0(%arg0: i32, %arg1: i32, %arg2: i32) -> (i32, i32, i32) {
    %c0_i32 = arith.constant 0 : i32
    %c0_i32_0 = arith.constant 0 : i32
    return %c0_i32, %arg0, %arg1 : i32, i32, i32
  }
  func.func @transform_1(%arg0: i32, %arg1: i32, %arg2: i32) -> (i32, i32, i32) {
    %c0_i32 = arith.constant 0 : i32
    %c0_i32_0 = arith.constant 0 : i32
    %c0_i32_1 = arith.constant 0 : i32
    return %c0_i32, %arg2, %c0_i32_0 : i32, i32, i32
  }
  func.func @transform_2(%arg0: i32, %arg1: i32, %arg2: i32) -> (i32, i32, i32) {
    %c0_i32 = arith.constant 0 : i32
    return %arg0, %arg2, %arg1 : i32, i32, i32
  }
}

</mosaic_0001>

<bundles_post_ra>
// kernel: encoder_forward.1
= control target key start
LH: loop header
LB: loop body
LE: loop exit
PB: predicated region body
PF: predicated region fallthrough
CT: control target
= control target key end

     0   :  { %v307_v2 = vmov 0   ;;  %s413_s0 = inlined_call_operand.vmem [shape: f32[2,2,128], index: 0, kind: input, shape index: {}]   ;;  %s414_s1 = inlined_call_operand.vmem [shape: f32[2,64,1], index: 1, kind: input, shape index: {}]   ;;  %s415_s2 = inlined_call_operand.hbm [shape: f32[2,64,128], index: 2, kind: output, shape index: {}]  }
   0x1   :  { %v14_v0 = vld [vmem:[%s414_s1 + $0x10] sm:$0xff]  ;;  %v12_v1 = vld [vmem:[%s414_s1] sm:$0xff]  ;;  %282 = vset.pattern.permute.xlu1 %v307_v2  ;;  %281 = vset.pattern.permute.xlu0 %v307_v2  ;;  %v15_v3 = vld [vmem:[%s414_s1 + $0x18] sm:$0xff] }
   0x2   :  { %74 = vperm.xlu1 %282, %v14_v0   ;;  %64 = vperm.xlu0 %281, %v12_v1   ;;  %v13_v4 = vld [vmem:[%s414_s1 + $0x8] sm:$0xff] }
   0x6   :  { %79 = vperm.xlu1 %282, %v15_v3   ;;  %69 = vperm.xlu0 %281, %v13_v4  }
   0x7   :  { %7 = vsyncpa [#allocation3], 0  ;;  %v17_v5 = vld [vmem:[%s414_s1 + $0x28] sm:$0xff]  ;;  %v16_v6 = vld [vmem:[%s414_s1 + $0x20] sm:$0xff]  ;;  %v308_v17 = vmov 1966171168   ;;  %v41_v19 = vlaneseq }
   0x8   :  { %v19_v7 = vld [vmem:[%s414_s1 + $0x38] sm:$0xff]  ;;  %v18_v8 = vld [vmem:[%s414_s1 + $0x30] sm:$0xff]  ;;  %v21_v9 = vld [vmem:[%s414_s1 + $0x48] sm:$0xff]  ;;  %v39_v18 = vunpack.c.l.s4 %v308_v17 }
   0x9   :  { %v20_v10 = vld [vmem:[%s414_s1 + $0x40] sm:$0xff]  ;;  %v23_v11 = vld [vmem:[%s414_s1 + $0x58] sm:$0xff]  ;;  %v22_v12 = vld [vmem:[%s414_s1 + $0x50] sm:$0xff]  ;;  %v42_v21 = vshrl.u32 %v41_v19, 7 }
   0xa   :  { %89 = vperm.xlu1 %282, %v17_v5   ;;  %84 = vperm.xlu0 %281, %v16_v6   ;;  %v25_v13 = vld [vmem:[%s414_s1 + $0x68] sm:$0xff]  ;;  %v24_v14 = vld [vmem:[%s414_s1 + $0x60] sm:$0xff]  ;;  %v27_v15 = vld [vmem:[%s414_s1 + $0x78] sm:$0xff]  ;;  %v40_v20 = vunpack.c.0.s8 %v39_v18 }
   0xb   :  { %v26_v16 = vld [vmem:[%s414_s1 + $0x70] sm:$0xff]  ;;  %v273_v24 = vld.sshfl [vmem:[%s413_s0] sm:$0x11 pattern:$0x75316420]  ;;  %v54_v33 = vsub.s32 0, %v42_v21 }
   0xc   :  { %v275_v25 = vld.sshfl [vmem:[%s413_s0 + $0x2] sm:$0x11 pattern:$0x75316420]  ;;  %v37_v26 = vcombine.high %v273_v24, %v273_v24  ;;  %v43_v27 = vsub.s32 %v40_v20, %v42_v21  ;;  %s309_s0 = smov [#allocation2]  }
   0xd   :  { %v128_v30 = vcombine.high %v275_v25, %v275_v25  ;;  %s262_s1 = sshll.u32 %s309_s0, 4  ;;  %s263_s1 = int_to_ptr.vmem [resolvable:$true] %s262_s1 }
   0xe   :  { %99 = vperm.xlu1 %282, %v19_v7   ;;  %94 = vperm.xlu0 %281, %v18_v8   ;;  %v44_v31 = vrot.slane %v273_v24, %v43_v27  ;;  %v51_v32 = vrot.slane %v37_v26, %v43_v27  ;;  %v135_v36 = vrot.slane %v275_v25, %v43_v27  ;;  %s283_s17 = scalar_lea.vmem %s263_s1, 2048  ;;  %p288_p1 = scmp.lt.s32.totalorder %s263_s1, %s263_s1 }
   0xf   :  { %v142_v37 = vrot.slane %v128_v30, %v43_v27  ;;  %p284_p0 = scmp.ne.s32.totalorder %s263_s1, %s283_s17  ;;  %p289_p2 = scmp.lt.s32.totalorder %s283_s17, %s283_s17 }
  0x10   :  { %v55_v38 = vrot.slane %v44_v31, %v54_v33  ;;  %v59_v39 = vrot.slane %v51_v32, %v54_v33  ;;  %v381_v42 = vrot.slane %v135_v36, %v54_v33 }
  0x11   :  { %v383_v43 = vrot.slane %v142_v37, %v54_v33  ;;  %p290_p3 = por %p289_p2, %p288_p1 }
  0x12   :  { %160 = vperm.xlu1 %282, %v21_v9   ;;  %155 = vperm.xlu0 %281, %v20_v10  }
  0x13   :  { %p291_p4 = pnand %p290_p3, %p284_p0 }
  0x16   :  { %170 = vperm.xlu1 %282, %v23_v11   ;;  %165 = vperm.xlu0 %281, %v22_v12  }
  0x1a   :  { %180 = vperm.xlu1 %282, %v25_v13   ;;  %175 = vperm.xlu0 %281, %v24_v14  }
  0x1e   :  { %190 = vperm.xlu1 %282, %v27_v15   ;;  %185 = vperm.xlu0 %281, %v26_v16  }
  0x81   :  { %v75_v22 = vpop.permute.xlu1 %74  ;;  %v65_v23 = vpop.permute.xlu0 %64 }
  0x82   :  { %v102_v44 = vmul.f32 %v65_v23, %v55_v38  ;;  %v110_v45 = vmul.f32 %v65_v23, %v59_v39  ;;  %v104_v58 = vmul.f32 %v75_v22, %v55_v38  ;;  %v112_v59 = vmul.f32 %v75_v22, %v59_v39 }
  0x85   :  { %v80_v28 = vpop.permute.xlu1 %79  ;;  %v70_v29 = vpop.permute.xlu0 %69 }
  0x86   :  { %v103_v46 = vmul.f32 %v70_v29, %v55_v38  ;;  %v111_v47 = vmul.f32 %v70_v29, %v59_v39  ;;  %v105_v60 = vmul.f32 %v80_v28, %v55_v38  ;;  %v113_v61 = vmul.f32 %v80_v28, %v59_v39 }
  0x89   :  { %v90_v34 = vpop.permute.xlu1 %89  ;;  %v85_v35 = vpop.permute.xlu0 %84 }
  0x8a   :  { %v107_v8 = vmul.f32 %v90_v34, %v55_v38  ;;  %v115_v9 = vmul.f32 %v90_v34, %v59_v39  ;;  %v106_v10 = vmul.f32 %v85_v35, %v55_v38  ;;  %v114_v11 = vmul.f32 %v85_v35, %v59_v39 }
  0x8d   :  { %v100_v40 = vpop.permute.xlu1 %99  ;;  %v95_v41 = vpop.permute.xlu0 %94 }
  0x8e   :  { %v109_v30 = vmul.f32 %v100_v40, %v55_v38  ;;  %v117_v31 = vmul.f32 %v100_v40, %v59_v39  ;;  %v108_v32 = vmul.f32 %v95_v41, %v55_v38  ;;  %v116_v33 = vmul.f32 %v95_v41, %v59_v39 }
  0x91   :  { %v161_v48 = vpop.permute.xlu1 %160  ;;  %v156_v49 = vpop.permute.xlu0 %155 }
  0x92   :  { %v194_v50 = vmul.f32 %v161_v48, %v381_v42  ;;  %v202_v51 = vmul.f32 %v161_v48, %v383_v43  ;;  %v193_v52 = vmul.f32 %v156_v49, %v381_v42  ;;  %v201_v53 = vmul.f32 %v156_v49, %v383_v43 }
  0x94   :  { %v210_v54 = vadd.f32 %v194_v50, %v103_v46  ;;  %v218_v55 = vadd.f32 %v202_v51, %v111_v47  ;;  %v209_v56 = vadd.f32 %v193_v52, %v102_v44  ;;  %v217_v57 = vadd.f32 %v201_v53, %v110_v45 }
  0x95   :  { %v171_v62 = vpop.permute.xlu1 %170  ;;  %v166_v63 = vpop.permute.xlu0 %165 }
  0x96   :  { %v226_v0 = vmax.f32 %v210_v54, 0.0  ;;  %v234_v1 = vmax.f32 %v218_v55, 0.0  ;;  %v225_v2 = vmax.f32 %v209_v56, 0.0  ;;  %v233_v3 = vmax.f32 %v217_v57, 0.0 }
  0x97   :  { %v196_v4 = vmul.f32 %v171_v62, %v381_v42  ;;  %v204_v5 = vmul.f32 %v171_v62, %v383_v43  ;;  %v195_v6 = vmul.f32 %v166_v63, %v381_v42  ;;  %v203_v7 = vmul.f32 %v166_v63, %v383_v43 }
  0x98   :  { %242 = vst [vmem:[#allocation2 + $0x8] sm:$0xff] %v226_v0  ;;  %250 = vst [vmem:[#allocation2 + $0x48] sm:$0xff] %v234_v1 }
  0x99   :  { %241 = vst [vmem:[#allocation2] sm:$0xff] %v225_v2  ;;  %249 = vst [vmem:[#allocation2 + $0x40] sm:$0xff] %v233_v3  ;;  %v212_v12 = vadd.f32 %v196_v4, %v105_v60  ;;  %v220_v13 = vadd.f32 %v204_v5, %v113_v61  ;;  %v211_v14 = vadd.f32 %v195_v6, %v104_v58  ;;  %v181_v16 = vpop.permute.xlu1 %180  ;;  %v176_v17 = vpop.permute.xlu0 %175 }
  0x9a   :  { %v219_v15 = vadd.f32 %v203_v7, %v112_v59  ;;  %v198_v18 = vmul.f32 %v181_v16, %v381_v42  ;;  %v206_v19 = vmul.f32 %v181_v16, %v383_v43  ;;  %v197_v20 = vmul.f32 %v176_v17, %v381_v42 }
  0x9b   :  { %v205_v21 = vmul.f32 %v176_v17, %v383_v43  ;;  %v228_v22 = vmax.f32 %v212_v12, 0.0  ;;  %v236_v23 = vmax.f32 %v220_v13, 0.0  ;;  %v227_v24 = vmax.f32 %v211_v14, 0.0 }
  0x9c   :  { %v235_v25 = vmax.f32 %v219_v15, 0.0  ;;  %v214_v26 = vadd.f32 %v198_v18, %v107_v8  ;;  %v222_v27 = vadd.f32 %v206_v19, %v115_v9  ;;  %v213_v28 = vadd.f32 %v197_v20, %v106_v10 }
  0x9d   :  { %v221_v29 = vadd.f32 %v205_v21, %v114_v11  ;;  %244 = vst [vmem:[#allocation2 + $0x18] sm:$0xff] %v228_v22  ;;  %252 = vst [vmem:[#allocation2 + $0x58] sm:$0xff] %v236_v23  ;;  %v191_v34 = vpop.permute.xlu1 %190  ;;  %v186_v35 = vpop.permute.xlu0 %185 }
  0x9e   :  { %243 = vst [vmem:[#allocation2 + $0x10] sm:$0xff] %v227_v24  ;;  %251 = vst [vmem:[#allocation2 + $0x50] sm:$0xff] %v235_v25  ;;  %v230_v36 = vmax.f32 %v214_v26, 0.0  ;;  %v238_v37 = vmax.f32 %v222_v27, 0.0  ;;  %v229_v44 = vmax.f32 %v213_v28, 0.0  ;;  %v200_v46 = vmul.f32 %v191_v34, %v381_v42 }
  0x9f   :  { %v237_v45 = vmax.f32 %v221_v29, 0.0  ;;  %v208_v47 = vmul.f32 %v191_v34, %v383_v43  ;;  %v199_v48 = vmul.f32 %v186_v35, %v381_v42  ;;  %v207_v40 = vmul.f32 %v186_v35, %v383_v43 }
  0xa0   :  { %246 = vst [vmem:[#allocation2 + $0x28] sm:$0xff] %v230_v36  ;;  %254 = vst [vmem:[#allocation2 + $0x68] sm:$0xff] %v238_v37  ;;  %v216_v38 = vadd.f32 %v200_v46, %v109_v30 }
  0xa1   :  { %245 = vst [vmem:[#allocation2 + $0x20] sm:$0xff] %v229_v44  ;;  %253 = vst [vmem:[#allocation2 + $0x60] sm:$0xff] %v237_v45  ;;  %v224_v39 = vadd.f32 %v208_v47, %v117_v31  ;;  %v215_v41 = vadd.f32 %v199_v48, %v108_v32  ;;  %v223_v49 = vadd.f32 %v207_v40, %v116_v33 }
  0xa2   :  { %v232_v50 = vmax.f32 %v216_v38, 0.0 }
  0xa3   :  { %v240_v51 = vmax.f32 %v224_v39, 0.0  ;;  %v231_v52 = vmax.f32 %v215_v41, 0.0  ;;  %v239_v53 = vmax.f32 %v223_v49, 0.0 }
  0xa4   :  { %248 = vst [vmem:[#allocation2 + $0x38] sm:$0xff] %v232_v50 }
  0xa5   :  { %256 = vst [vmem:[#allocation2 + $0x78] sm:$0xff] %v240_v51  ;;  %247 = vst [vmem:[#allocation2 + $0x30] sm:$0xff] %v231_v52 }
  0xa6   :  { %255 = vst [vmem:[#allocation2 + $0x70] sm:$0xff] %v239_v53 }
  0xa7   :  { %294 = shalt.err (!%p291_p4)
}
  0xa8   :  { %s295_s20 = scalar_lea.hbm %s415_s2, 2048 }
  0xa9   :  { %p296_p5 = scmp.ne.s32.totalorder %s415_s2, %s295_s20  ;;  %p299_p6 = scmp.lt.u32.totalorder %s295_s20, %s415_s2 }
  0xab   :  { %p301_p7 = pnand %p299_p6, %p296_p5 }
  0xad   :  { %304 = shalt.err (!%p301_p7)
}
  0xae   :  { %s310_s25 = smov 128   ;;  %s311_s26 = smov 8  }
  0xaf   :  { %268 = dma.vmem_to_hbm [thread:$0]  %s263_s1, 2048, %s415_s2, [#allocation3], %s310_s25, %s310_s25, %s311_s26  }
  0xb0   :  { %305 = dma.done.wait [#allocation3], 2048  }
  0xb1   :  { %306 = vsyncadd [#allocation3], 4294965248 }
  0xb2   :  { %272 = vsyncpa [#allocation3], 1 }

</bundles_post_ra>
